<compile_context>
chip_gen: v7x
topology: tpu7x:2x2x1
jax: 0.10.0
libtpu: 0.0.40
codegen_flags: <defaults>
</compile_context>

<pallas_src>
import functools

import jax
import jax.numpy as jnp
from jax.experimental import pallas as pl
from jax.experimental.pallas import tpu as pltpu


# ----------------------------------------------------------------------------
# Kernel: 3x3 conv (one im2col MXU matmul, feature-major) + bias + ReLU
#         + fused spatial-sum accumulator (average-pool numerator)
# ----------------------------------------------------------------------------
def conv_relu_pool_kernel(p_ref, w_ref, b_ref, f_ref, psum_ref, *, hw, tr, mask_rows):
    # p_ref   : (1, K, TR)    bf16 im2col patches, feature-major (K = 9*Cin, lane = TR)
    # w_ref   : (TCO, K)      bf16 reshaped conv weight tile
    # b_ref   : (TCO, 1)      f32 bias tile
    # f_ref   : (1, TCO, TR)  feats tile (bf16 by default) -> (B, F, H*W) == NCHW flattened
    # psum_ref: (1, TCO, 1)   f32 spatial sum of ReLU'd features, accumulated across the
    #                         spatial grid axis (innermost, "arbitrary")
    r = pl.program_id(2)  # spatial tile index (reduction axis for psum)

    # Single K = 9*Cin matmul on the MXU, f32 accumulation, bf16 operands.
    acc = jnp.dot(w_ref[...], p_ref[0], preferred_element_type=jnp.float32)  # (TCO, TR)
    acc = jnp.maximum(acc + b_ref[...], 0.0)                                 # f32 bias+ReLU

    f_ref[...] = acc[None].astype(f_ref.dtype)       # lane-dense (TR-wide) store

    @pl.when(r == 0)
    def _():
        psum_ref[...] = jnp.zeros_like(psum_ref)

    if mask_rows:
        # Only emitted when H*W was padded up to a multiple of TR: padded spatial
        # positions hold ReLU(bias) garbage and must not contribute to the pool.
        col = jax.lax.broadcasted_iota(jnp.int32, (1, tr), 1) + r * tr
        acc = jnp.where(col < hw, acc, 0.0)
    psum_ref[...] += jnp.sum(acc, axis=-1, keepdims=True)[None]   # XLU lane reduce


# ----------------------------------------------------------------------------
# Wrapper
# ----------------------------------------------------------------------------
def cassava_net_forward(x_nchw, params, feats_dtype=jnp.bfloat16):
    """x_nchw: (B, Cin, H, W) float32.  Returns (logits (B, 5), feats (B, F, H, W)).

    feats_dtype: bf16 by default (halves the dominant HBM writeback); pass jnp.float32
    for full-precision feats storage.  Conv/Linear use bf16 MXU operands with f32
    accumulation (the PyTorch model runs f32 end-to-end).
    """
    w_conv, b_conv = params["w_conv"], params["b_conv"]
    w_cls, b_cls = params["w_cls"], params["b_cls"]
    B, Cin, H, W = x_nchw.shape
    F = w_conv.shape[-1]
    HW = H * W
    K = 9 * Cin

    # ---- tile sizes: lane-dense multiples of 128, sized for the HBM roofline ----
    TR = min(512, pl.cdiv(HW, 128) * 128)          # spatial tile (lane dim of feats)
    HW_pad = pl.cdiv(HW, TR) * TR
    F_pad = pl.cdiv(F, 128) * 128
    # Fold all of Cout into one tile so the 9x im2col patches are read from HBM once.
    # When B == 1, split F into two tiles so both v7x TensorCores get a parallel axis.
    if B >= 2 or F_pad == 128 or F_pad % 256 != 0:
        TCO = F_pad
    else:
        TCO = F_pad // 2

    # ---- layout plumbing in XLA (not compute): im2col (feature-major), pad, bf16 ----
    xp = jnp.pad(x_nchw.astype(jnp.bfloat16), ((0, 0), (0, 0), (1, 1), (1, 1)))
    taps = [xp[:, :, ky:ky + H, kx:kx + W] for ky in range(3) for kx in range(3)]
    patches = jnp.stack(taps, axis=1).reshape(B, K, HW)        # (B, 9*Cin, H*W), bf16
    if HW_pad != HW:
        patches = jnp.pad(patches, ((0, 0), (0, 0), (0, HW_pad - HW)))

    w_mm = w_conv.reshape(K, F).T.astype(jnp.bfloat16)         # (F, 9*Cin), (ky,kx,c) order
    b2 = b_conv.reshape(F, 1).astype(jnp.float32)
    if F_pad != F:
        w_mm = jnp.pad(w_mm, ((0, F_pad - F), (0, 0)))         # zero rows -> zero feats
        b2 = jnp.pad(b2, ((0, F_pad - F), (0, 0)))

    grid = (B, F_pad // TCO, HW_pad // TR)
    kernel = functools.partial(conv_relu_pool_kernel, hw=HW, tr=TR,
                               mask_rows=(HW_pad != HW))

    feats_full, psum = pl.pallas_call(
        kernel,
        out_shape=(
            jax.ShapeDtypeStruct((B, F_pad, HW_pad), feats_dtype),   # NCHW-flat feats
            jax.ShapeDtypeStruct((B, F_pad, 1), jnp.float32),        # spatial sums
        ),
        grid=grid,
        in_specs=[
            pl.BlockSpec((1, K, TR), lambda b, co, r: (b, 0, r)),    # co-independent
            pl.BlockSpec((TCO, K), lambda b, co, r: (co, 0)),
            pl.BlockSpec((TCO, 1), lambda b, co, r: (co, 0)),
        ],
        out_specs=(
            pl.BlockSpec((1, TCO, TR), lambda b, co, r: (b, co, r)),
            pl.BlockSpec((1, TCO, 1), lambda b, co, r: (b, co, 0)),  # resident across r
        ),
        compiler_params=pltpu.CompilerParams(
            dimension_semantics=("parallel", "parallel", "arbitrary"),
        ),
    )(patches, w_mm, b2)

    # Classifier on the pooled sums only: (B,F)@(F,5) is a few KFLOP, so it stays in
    # XLA — a dedicated pallas_call is pure launch overhead + an extra HBM round trip.
    pooled = psum[:, :F, 0] * (1.0 / float(HW))                      # (B, F) f32
    logits = jnp.dot(pooled.astype(jnp.bfloat16),
                     w_cls.T.astype(jnp.bfloat16),
                     preferred_element_type=jnp.float32) + b_cls     # (B, 5)

    feats = feats_full[:, :F, :HW].reshape(B, F, H, W)               # NCHW, no transpose
    return logits, feats


def init_params(key, cin, n_features):
    k1, k2, k3 = jax.random.split(key, 3)
    return {
        "w_conv": 0.1 * jax.random.normal(k1, (3, 3, cin, n_features), jnp.float32),
        "b_conv": jnp.linspace(-0.1, 0.1, n_features, dtype=jnp.float32),
        "w_cls": 0.1 * jax.random.normal(k2, (5, n_features), jnp.float32),
        "b_cls": 0.01 * jax.random.normal(k3, (5,), jnp.float32),
    }


if __name__ == "__main__":
    B, Cin, H, W = 2, 3, 16, 16
    n_features = 256                       # lane-dense feature width (multiple of 128)

    key = jax.random.PRNGKey(0)
    kx_, kp = jax.random.split(key)
    x = jax.random.normal(kx_, (B, Cin, H, W), jnp.float32)
    params = init_params(kp, Cin, n_features)

    fwd = jax.jit(cassava_net_forward)
    logits, feats = fwd(x, params)
    jax.block_until_ready((logits, feats))

    # Reference with the same numerics (bf16 MXU operands, f32 accumulation).
    ref_feats = jax.lax.conv_general_dilated(
        x.astype(jnp.bfloat16), params["w_conv"].astype(jnp.bfloat16),
        window_strides=(1, 1), padding="SAME",
        dimension_numbers=("NCHW", "HWIO", "NCHW"),
        preferred_element_type=jnp.float32)
    ref_feats = jnp.maximum(ref_feats + params["b_conv"].reshape(1, -1, 1, 1), 0.0)
    ref_pool = jnp.mean(ref_feats, axis=(2, 3))
    ref_logits = jnp.dot(ref_pool.astype(jnp.bfloat16),
                         params["w_cls"].T.astype(jnp.bfloat16),
                         preferred_element_type=jnp.float32) + params["b_cls"]

    assert logits.shape == (B, 5)
    assert feats.shape == (B, n_features, H, W)
    assert jnp.allclose(feats.astype(jnp.float32), ref_feats, atol=2e-2, rtol=2e-2)
    assert jnp.allclose(logits, ref_logits, atol=2e-2, rtol=2e-2)

    print("KERNEL_OK")
</pallas_src>

<mosaic_0001>
module attributes {stable_mosaic.version = 11 : i64} {
  func.func @conv_relu_pool_kernel(%arg0: i32, %arg1: i32, %arg2: i32, %arg3: memref<1x27x256xbf16, #tpu.memory_space<vmem>>, %arg4: memref<256x27xbf16, #tpu.memory_space<vmem>>, %arg5: memref<256x1xf32, #tpu.memory_space<vmem>>, %arg6: memref<1x256x256xbf16, #tpu.memory_space<vmem>>, %arg7: memref<1x256x1xf32, #tpu.memory_space<vmem>>) attributes {dimension_semantics = [#tpu.dimension_semantics<parallel>, #tpu.dimension_semantics<parallel>, #tpu.dimension_semantics<arbitrary>], iteration_bounds = array<i64: 2, 1, 1>, scalar_prefetch = 0 : i64, scratch_operands = 0 : i64, tpu.core_type = #tpu.core_type<tc>, window_params = [{transform_indices = @transform_0, window_bounds = array<i64: 1, 27, 256>}, {transform_indices = @transform_1, window_bounds = array<i64: 256, 27>}, {transform_indices = @transform_2, window_bounds = array<i64: 256, 1>}, {transform_indices = @transform_3, window_bounds = array<i64: 1, 256, 256>}, {transform_indices = @transform_4, window_bounds = array<i64: 1, 256, 1>}]} {
    %c0 = arith.constant 0 : index
    %c0_0 = arith.constant 0 : index
    %0 = vector.load %arg4[%c0, %c0_0] : memref<256x27xbf16, #tpu.memory_space<vmem>>, vector<256x27xbf16>
    %c0_1 = arith.constant 0 : index
    %c0_2 = arith.constant 0 : index
    %c0_3 = arith.constant 0 : index
    %1 = vector.load %arg3[%c0_1, %c0_2, %c0_3] : memref<1x27x256xbf16, #tpu.memory_space<vmem>>, vector<1x27x256xbf16>
    %2 = vector.shape_cast %1 : vector<1x27x256xbf16> to vector<27x256xbf16>
    %cst = arith.constant dense<0.000000e+00> : vector<256x256xf32>
    %3 = tpu.matmul %0, %2, %cst {dimension_numbers = #tpu.dot_dimension_numbers<[1], [0], [0], [1], [0, 0, 1, 1], [], []>} : vector<256x27xbf16>, vector<27x256xbf16>, vector<256x256xf32> -> vector<256x256xf32>
    %c0_4 = arith.constant 0 : index
    %c0_5 = arith.constant 0 : index
    %4 = vector.load %arg5[%c0_4, %c0_5] : memref<256x1xf32, #tpu.memory_space<vmem>>, vector<256x1xf32>
    %5 = vector.broadcast %4 : vector<256x1xf32> to vector<256x256xf32>
    %6 = arith.addf %3, %5 : vector<256x256xf32>
    %cst_6 = arith.constant 0.000000e+00 : f32
    %7 = vector.broadcast %cst_6 : f32 to vector<256x256xf32>
    %8 = arith.maximumf %6, %7 : vector<256x256xf32>
    %9 = vector.shape_cast %8 : vector<256x256xf32> to vector<1x256x256xf32>
    %10 = arith.truncf %9 : vector<1x256x256xf32> to vector<1x256x256xbf16>
    %c0_7 = arith.constant 0 : index
    %c0_8 = arith.constant 0 : index
    %c0_9 = arith.constant 0 : index
    %11 = vector.load %arg6[%c0_7, %c0_8, %c0_9] : memref<1x256x256xbf16, #tpu.memory_space<vmem>>, vector<1x256x256xbf16>
    tpu.vector_store %arg6[%c0_7, %c0_8, %c0_9], %10 {strides = array<i32>} : memref<1x256x256xbf16, #tpu.memory_space<vmem>>, vector<1x256x256xbf16>,
    %c0_i32 = arith.constant 0 : i32
    %12 = arith.cmpi eq, %arg2, %c0_i32 : i32
    %13 = arith.extui %12 : i1 to i32
    %c0_i32_10 = arith.constant 0 : i32
    %14 = arith.cmpi ne, %13, %c0_i32_10 : i32
    scf.if %14 {
      %cst_18 = arith.constant 0.000000e+00 : f32
      %21 = vector.broadcast %cst_18 : f32 to vector<1x256x1xf32>
      %c0_19 = arith.constant 0 : index
      %c0_20 = arith.constant 0 : index
      %c0_21 = arith.constant 0 : index
      %22 = vector.load %arg7[%c0_19, %c0_20, %c0_21] : memref<1x256x1xf32, #tpu.memory_space<vmem>>, vector<1x256x1xf32>
      tpu.vector_store %arg7[%c0_19, %c0_20, %c0_21], %21 {strides = array<i32>} : memref<1x256x1xf32, #tpu.memory_space<vmem>>, vector<1x256x1xf32>,
    } else {
    }
    %c0_11 = arith.constant 0 : index
    %c0_12 = arith.constant 0 : index
    %c0_13 = arith.constant 0 : index
    %15 = vector.load %arg7[%c0_11, %c0_12, %c0_13] : memref<1x256x1xf32, #tpu.memory_space<vmem>>, vector<1x256x1xf32>
    %cst_14 = arith.constant dense<0.000000e+00> : vector<256xf32>
    %16 = vector.multi_reduction <add>, %8, %cst_14 [1] : vector<256x256xf32> to vector<256xf32>
    %17 = vector.shape_cast %16 : vector<256xf32> to vector<256x1xf32>
    %18 = vector.shape_cast %17 : vector<256x1xf32> to vector<1x256x1xf32>
    %19 = arith.addf %15, %18 : vector<1x256x1xf32>
    %c0_15 = arith.constant 0 : index
    %c0_16 = arith.constant 0 : index
    %c0_17 = arith.constant 0 : index
    %20 = vector.load %arg7[%c0_15, %c0_16, %c0_17] : memref<1x256x1xf32, #tpu.memory_space<vmem>>, vector<1x256x1xf32>
    tpu.vector_store %arg7[%c0_15, %c0_16, %c0_17], %19 {strides = array<i32>} : memref<1x256x1xf32, #tpu.memory_space<vmem>>, vector<1x256x1xf32>,
    return
  }
  func.func @transform_0(%arg0: i32, %arg1: i32, %arg2: i32) -> (i32, i32, i32) {
    %c0_i32 = arith.constant 0 : i32
    %c0_i32_0 = arith.constant 0 : i32
    return %arg0, %c0_i32, %arg2 : i32, i32, i32
  }
  func.func @transform_1(%arg0: i32, %arg1: i32, %arg2: i32) -> (i32, i32) {
    %c0_i32 = arith.constant 0 : i32
    %c0_i32_0 = arith.constant 0 : i32
    return %arg1, %c0_i32 : i32, i32
  }
  func.func @transform_2(%arg0: i32, %arg1: i32, %arg2: i32) -> (i32, i32) {
    %c0_i32 = arith.constant 0 : i32
    %c0_i32_0 = arith.constant 0 : i32
    return %arg1, %c0_i32 : i32, i32
  }
  func.func @transform_3(%arg0: i32, %arg1: i32, %arg2: i32) -> (i32, i32, i32) {
    %c0_i32 = arith.constant 0 : i32
    return %arg0, %arg1, %arg2 : i32, i32, i32
  }
  func.func @transform_4(%arg0: i32, %arg1: i32, %arg2: i32) -> (i32, i32, i32) {
    %c0_i32 = arith.constant 0 : i32
    %c0_i32_0 = arith.constant 0 : i32
    return %arg0, %arg1, %c0_i32 : i32, i32, i32
  }
}

</mosaic_0001>

<bundles_post_ra>
// kernel: cassava_net_forward.1
= control target key start
LH: loop header
LB: loop body
LE: loop exit
PB: predicated region body
PF: predicated region fallthrough
CT: control target
= control target key end

     0   :  { %s1836_s15 = smov 0   ;;  %s1838_s16 = smov 0   ;;  %s2310_s0 = inlined_call_operand.vmem [shape: bf16[2,27,256], index: 0, kind: input, shape index: {}]   ;;  %s2311_s1 = inlined_call_operand.vmem [shape: bf16[256,27], index: 1, kind: input, shape index: {}]   ;;  %s2312_s2 = inlined_call_operand.vmem [shape: f32[256,1], index: 2, kind: input, shape index: {}]   ;;  %s2313_s3 = inlined_call_operand.vmem [shape: bf16[2,256,256], index: 3, kind: output, shape index: {0}]   ;;  %s2314_s4 = inlined_call_operand.vmem [shape: f32[2,256,1], index: 4, kind: output, shape index: {1}]  }
   0x1   :  { %s1840_s17 = smov 0  }
   0x2 LB: > { %s34_s18 = sadd.s32 1, %s1802_s16  ;;  %p1617_p0 = scmp.ge.s32.totalorder %s1806_s17, 1  ;;  %s1806_s17 = sphi %s1840_s17, %s15_s17   ;;  %s1802_s16 = sphi %s1838_s16, %s2316_s16   ;;  %s1798_s15 = sphi %s1836_s15, %s2315_s15  }
   0x3   : > { %p36_p1 = scmp.ge.s32.totalorder %s34_s18, 2  ;;  %p219_p2 = scmp.lt.s32.totalorder %s1806_s17, 3 }
   0x5   : > { %s2318_s18 = smov (%p36_p1, %s34_s18), 0  ;;  %p220_p3 = pnand %p1617_p0, %p219_p2 }
   0x6   : > { %p278_p4 = scmp.lt.s32.totalorder (!%p220_p3), %s1798_s15, 1  ;;  %v364_v0 = vld [vmem:[%s2312_s2 + $0x10] sm:$0xff] (!%p220_p3)  ;;  %v1808_v1 = vmov (!%p220_p3), 0   ;;  %vm701_vm0 = vcmask (!%p220_p3), 1044480   ;;  %v365_v2 = vld [vmem:[%s2312_s2 + $0x18] sm:$0xff] (!%p220_p3)  ;;  %v362_v3 = vld [vmem:[%s2312_s2] sm:$0xff] (!%p220_p3) }
   0x7   : > { %223 = sbr.rel (%p220_p3) target bundleno = 455 (0x1c7), region = 32  ;;  %1761 = vset.pattern.permute.xlu1 (!%p220_p3), %v1808_v1  ;;  %743 = vmatprep.mubr.bf16.mxu0 (!%p220_p3), %v1808_v1  ;;  %vm702_vm1 = vcmask (!%p220_p3), 1045504   ;;  %v1809_v4 = vmov (!%p220_p3), 65535   ;;  %v367_v6 = vld [vmem:[%s2312_s2 + $0x28] sm:$0xff] (!%p220_p3)  ;;  %v1768_v15 = vld [vmem:[%s2311_s1] sm:$0xff] (!%p220_p3)   ;;  %v369_v16 = vld [vmem:[%s2312_s2 + $0x38] sm:$0xff] (!%p220_p3) }
   0x8   : > { %406 = vperm.xlu1 (!%p220_p3), %1761, %v364_v0   ;;  %823 = vmatprep.mubr.bf16.mxu1 (!%p220_p3), %v1808_v1  ;;  %v703_v5 = vsel (!%p220_p3), %vm701_vm0, 4294967295, %v1809_v4  ;;  %v363_v7 = vld [vmem:[%s2312_s2 + $0x8] sm:$0xff] (!%p220_p3)  ;;  %v366_v17 = vld [vmem:[%s2312_s2 + $0x20] sm:$0xff] (!%p220_p3)  ;;  %vm652_vm2 = vcmask (!%p220_p3), 220160   ;;  %v368_v20 = vld [vmem:[%s2312_s2 + $0x30] sm:$0xff] (!%p220_p3)  ;;  %vm1196_vm3 = vcmask (!%p220_p3), 7168  }
   0x9   : > { %1760 = vset.pattern.permute.xlu0 (!%p220_p3), %v1808_v1  ;;  %v704_v10 = vsel (!%p220_p3), %vm702_vm1, %v703_v5, 0  ;;  %v1769_v18 = vld [vmem:[%s2311_s1 + $0x40] sm:$0xff] (!%p220_p3)   ;;  %v371_v19 = vld [vmem:[%s2312_s2 + $0x48] sm:$0xff] (!%p220_p3)  ;;  %v373_v21 = vld [vmem:[%s2312_s2 + $0x58] sm:$0xff] (!%p220_p3)  ;;  %v1810_v58 = vmov (!%p220_p3), 0.0  }
   0xa   : > { %396 = vperm.xlu0 (!%p220_p3), %1760, %v362_v3   ;;  %v370_v22 = vld [vmem:[%s2312_s2 + $0x40] sm:$0xff] (!%p220_p3)  ;;  %v1770_v23 = vld [vmem:[%s2311_s1 + $0x8] sm:$0xff] (!%p220_p3)   ;;  %v372_v26 = vld [vmem:[%s2312_s2 + $0x50] sm:$0xff] (!%p220_p3) }
   0xb   : > { %v1771_v24 = vld [vmem:[%s2311_s1 + $0x48] sm:$0xff] (!%p220_p3)   ;;  %v1772_v27 = vld [vmem:[%s2311_s1 + $0x10] sm:$0xff] (!%p220_p3)   ;;  %v377_v28 = vld [vmem:[%s2312_s2 + $0x78] sm:$0xff] (!%p220_p3) }
   0xc   : > { %411 = vperm.xlu1 (!%p220_p3), %1761, %v365_v2   ;;  %v375_v25 = vld [vmem:[%s2312_s2 + $0x68] sm:$0xff] (!%p220_p3)  ;;  %v374_v29 = vld [vmem:[%s2312_s2 + $0x60] sm:$0xff] (!%p220_p3)  ;;  %v1773_v30 = vld [vmem:[%s2311_s1 + $0x50] sm:$0xff] (!%p220_p3)  }
   0xd   : > { %v379_v31 = vld [vmem:[%s2312_s2 + $0x88] sm:$0xff] (!%p220_p3)  ;;  %v376_v32 = vld [vmem:[%s2312_s2 + $0x70] sm:$0xff] (!%p220_p3)  ;;  %v381_v33 = vld [vmem:[%s2312_s2 + $0x98] sm:$0xff] (!%p220_p3) }
   0xe   : > { %s2320_s15 = smov (!%p278_p4, %s1798_s15), 1  ;;  %401 = vperm.xlu0 %1760, %v363_v7   ;;  %v378_v34 = vld [vmem:[%s2312_s2 + $0x80] sm:$0xff]  ;;  %v1774_v35 = vld [vmem:[%s2311_s1 + $0x18] sm:$0xff]   ;;  %v383_v37 = vld [vmem:[%s2312_s2 + $0xa8] sm:$0xff] }
   0xf   : > { %s1694_s25 = sshll.u32 %s2320_s15, 5  ;;  %v1775_v36 = vld [vmem:[%s2311_s1 + $0x58] sm:$0xff]   ;;  %v380_v38 = vld [vmem:[%s2312_s2 + $0x90] sm:$0xff]  ;;  %v382_v40 = vld [vmem:[%s2312_s2 + $0xa0] sm:$0xff]  ;;  %s1695_s5 = sshll.u32 %s2320_s15, 8 }
  0x10   : > { %s285_s28 = scalar_lea.vmem %s2310_s0, %s1694_s25  ;;  %421 = vperm.xlu1 %1761, %v367_v6   ;;  %v385_v39 = vld [vmem:[%s2312_s2 + $0xb8] sm:$0xff]  ;;  %v1776_v41 = vld [vmem:[%s2311_s1 + $0x20] sm:$0xff]   ;;  %v387_v43 = vld [vmem:[%s2312_s2 + $0xc8] sm:$0xff]  ;;  %s2044_s8 = scalar_lea.vmem %s2314_s4, %s1695_s5 }
  0x11   : > { %v1762_v8 = vld [vmem:[%s285_s28 + $0x4] ss:$8 sps:$4 sm:$0xff]   ;;  %v1764_v9 = vld [vmem:[%s285_s28] ss:$8 sps:$4 sm:$0xff]   ;;  %v384_v44 = vld [vmem:[%s2312_s2 + $0xb0] sm:$0xff]  ;;  %1213 = vst.msk [vmem:[%s2044_s8 + $0x80] sm:$0xff] %vm1196_vm3, %v1810_v58  ;;  %s2143_s11 = scalar_lea.vmem %s2313_s3, %s1695_s5 }
  0x12   : > { %711 = vmatprep.subr.bf16.mxu0 %v1762_v8  ;;  %1729 = vmatprep.subr.bf16.mxu1 %v1762_v8  ;;  %v1765_v11 = vld [vmem:[%s285_s28 + $0x14] ss:$8 sps:$4 sm:$0x3f]   ;;  %v1767_v12 = vld [vmem:[%s285_s28 + $0x10] ss:$8 sps:$4 sm:$0x3f]  }
  0x13   : > { %712 = vmatpush1.bf16.msra.mxu0 %v1764_v9  ;;  %1731 = vmatpush1.bf16.msra.mxu1 %v1764_v9  ;;  %v709_v13 = vand.u32 %v1765_v11, %v704_v10  ;;  %v706_v14 = vand.u32 %v1767_v12, %v704_v10  ;;  %v1777_v42 = vld [vmem:[%s2311_s1 + $0x60] sm:$0xff]   ;;  %v389_v45 = vld [vmem:[%s2312_s2 + $0xd8] sm:$0xff]  ;;  %v1778_v47 = vld [vmem:[%s2311_s1 + $0x28] sm:$0xff]   ;;  %1197 = vst.msk [vmem:[%s2044_s8] sm:$0xff] %vm1196_vm3, %v1810_v58 }
  0x14   : > { %431 = vperm.xlu1 %1761, %v369_v16   ;;  %416 = vperm.xlu0 %1760, %v366_v17   ;;  %v386_v46 = vld [vmem:[%s2312_s2 + $0xc0] sm:$0xff]  ;;  %v1779_v48 = vld [vmem:[%s2311_s1 + $0x68] sm:$0xff]   ;;  %v388_v50 = vld [vmem:[%s2312_s2 + $0xd0] sm:$0xff]  ;;  %1198 = vst.msk [vmem:[%s2044_s8 + $0x8] sm:$0xff] %vm1196_vm3, %v1810_v58 }
  0x15   : > { %713 = vmatprep.subr.bf16.mxu0 %v709_v13  ;;  %1730 = vmatprep.subr.bf16.mxu1 %v709_v13  ;;  %v391_v49 = vld [vmem:[%s2312_s2 + $0xe8] sm:$0xff]  ;;  %v393_v51 = vld [vmem:[%s2312_s2 + $0xf8] sm:$0xff]  ;;  %v390_v52 = vld [vmem:[%s2312_s2 + $0xe0] sm:$0xff]  ;;  %1199 = vst.msk [vmem:[%s2044_s8 + $0x10] sm:$0xff] %vm1196_vm3, %v1810_v58 }
  0x16   : > { %v1780_v53 = vld [vmem:[%s2311_s1 + $0x30] sm:$0xff]   ;;  %v1782_v56 = vld [vmem:[%s2311_s1 + $0x38] sm:$0xff]   ;;  %1200 = vst.msk [vmem:[%s2044_s8 + $0x18] sm:$0xff] %vm1196_vm3, %v1810_v58  ;;  %1201 = vst.msk [vmem:[%s2044_s8 + $0x20] sm:$0xff] %vm1196_vm3, %v1810_v58 }
  0x17   : > { %714 = vmatpush1.bf16.msra.mxu0 %v706_v14  ;;  %1732 = vmatpush1.bf16.msra.mxu1 %v706_v14  ;;  %v1781_v54 = vld [vmem:[%s2311_s1 + $0x70] sm:$0xff]   ;;  %v1783_v57 = vld [vmem:[%s2311_s1 + $0x78] sm:$0xff]   ;;  %1202 = vst.msk [vmem:[%s2044_s8 + $0x28] sm:$0xff] %vm1196_vm3, %v1810_v58  ;;  %1203 = vst.msk [vmem:[%s2044_s8 + $0x30] sm:$0xff] %vm1196_vm3, %v1810_v58 }
  0x18   : > { %441 = vperm.xlu1 %1761, %v371_v19   ;;  %426 = vperm.xlu0 %1760, %v368_v20   ;;  %v392_v55 = vld [vmem:[%s2312_s2 + $0xf0] sm:$0xff]  ;;  %1204 = vst.msk [vmem:[%s2044_s8 + $0x38] sm:$0xff] %vm1196_vm3, %v1810_v58  ;;  %1205 = vst.msk [vmem:[%s2044_s8 + $0x40] sm:$0xff] %vm1196_vm3, %v1810_v58 }
  0x19   : > { %1206 = vst.msk [vmem:[%s2044_s8 + $0x48] sm:$0xff] %vm1196_vm3, %v1810_v58  ;;  %1207 = vst.msk [vmem:[%s2044_s8 + $0x50] sm:$0xff] %vm1196_vm3, %v1810_v58 }
  0x1a   : > { %1644 = vmatmul.mubr.msk.bf16.vlgmr.msra.gmra.mrb[0].mxu0 %vm652_vm2, %v1768_v15  ;;  %1652 = vmatmul.mubr.msk.bf16.vlgmr.msra.gmra.mrb[0].mxu1 %vm652_vm2, %v1769_v18  ;;  %1208 = vst.msk [vmem:[%s2044_s8 + $0x58] sm:$0xff] %vm1196_vm3, %v1810_v58  ;;  %1209 = vst.msk [vmem:[%s2044_s8 + $0x60] sm:$0xff] %vm1196_vm3, %v1810_v58 }
  0x1b   : > { %753 = vmatprep.mubr.bf16.mxu0 %v1808_v1  ;;  %833 = vmatprep.mubr.bf16.mxu1 %v1808_v1  ;;  %1210 = vst.msk [vmem:[%s2044_s8 + $0x68] sm:$0xff] %vm1196_vm3, %v1810_v58  ;;  %1211 = vst.msk [vmem:[%s2044_s8 + $0x70] sm:$0xff] %vm1196_vm3, %v1810_v58 }
  0x1c   : > { %451 = vperm.xlu1 %1761, %v373_v21   ;;  %436 = vperm.xlu0 %1760, %v370_v22   ;;  %1212 = vst.msk [vmem:[%s2044_s8 + $0x78] sm:$0xff] %vm1196_vm3, %v1810_v58  ;;  %1214 = vst.msk [vmem:[%s2044_s8 + $0x88] sm:$0xff] %vm1196_vm3, %v1810_v58 }
  0x1d   : > { %1215 = vst.msk [vmem:[%s2044_s8 + $0x90] sm:$0xff] %vm1196_vm3, %v1810_v58  ;;  %1216 = vst.msk [vmem:[%s2044_s8 + $0x98] sm:$0xff] %vm1196_vm3, %v1810_v58 }
  0x1e   : > { %1217 = vst.msk [vmem:[%s2044_s8 + $0xa0] sm:$0xff] %vm1196_vm3, %v1810_v58  ;;  %1218 = vst.msk [vmem:[%s2044_s8 + $0xa8] sm:$0xff] %vm1196_vm3, %v1810_v58 }
  0x1f   : > { %1219 = vst.msk [vmem:[%s2044_s8 + $0xb0] sm:$0xff] %vm1196_vm3, %v1810_v58  ;;  %1220 = vst.msk [vmem:[%s2044_s8 + $0xb8] sm:$0xff] %vm1196_vm3, %v1810_v58 }
  0x20   : > { %461 = vperm.xlu1 %1761, %v375_v25   ;;  %446 = vperm.xlu0 %1760, %v372_v26   ;;  %1221 = vst.msk [vmem:[%s2044_s8 + $0xc0] sm:$0xff] %vm1196_vm3, %v1810_v58  ;;  %1222 = vst.msk [vmem:[%s2044_s8 + $0xc8] sm:$0xff] %vm1196_vm3, %v1810_v58 }
  0x21   : > { %1223 = vst.msk [vmem:[%s2044_s8 + $0xd0] sm:$0xff] %vm1196_vm3, %v1810_v58  ;;  %1224 = vst.msk [vmem:[%s2044_s8 + $0xd8] sm:$0xff] %vm1196_vm3, %v1810_v58 }
  0x22   : > { %1645 = vmatmul.mubr.msk.bf16.gmra.mrb[4].mxu0 %vm652_vm2, %v1770_v23  ;;  %1653 = vmatmul.mubr.msk.bf16.gmra.mrb[4].mxu1 %vm652_vm2, %v1771_v24  ;;  %1225 = vst.msk [vmem:[%s2044_s8 + $0xe0] sm:$0xff] %vm1196_vm3, %v1810_v58  ;;  %1226 = vst.msk [vmem:[%s2044_s8 + $0xe8] sm:$0xff] %vm1196_vm3, %v1810_v58 }
  0x23   : > { %763 = vmatprep.mubr.bf16.mxu0 %v1808_v1  ;;  %843 = vmatprep.mubr.bf16.mxu1 %v1808_v1  ;;  %1227 = vst.msk [vmem:[%s2044_s8 + $0xf0] sm:$0xff] %vm1196_vm3, %v1810_v58  ;;  %1228 = vst.msk [vmem:[%s2044_s8 + $0xf8] sm:$0xff] %vm1196_vm3, %v1810_v58 }
  0x24   : > { %471 = vperm.xlu1 %1761, %v377_v28   ;;  %456 = vperm.xlu0 %1760, %v374_v29  }
  0x28   : > { %481 = vperm.xlu1 %1761, %v379_v31   ;;  %466 = vperm.xlu0 %1760, %v376_v32  }
  0x2a   : > { %1646 = vmatmul.mubr.msk.bf16.gmra.mrb[8].mxu0 %vm652_vm2, %v1772_v27  ;;  %1654 = vmatmul.mubr.msk.bf16.gmra.mrb[8].mxu1 %vm652_vm2, %v1773_v30 }
  0x2b   : > { %773 = vmatprep.mubr.bf16.mxu0 %v1808_v1  ;;  %853 = vmatprep.mubr.bf16.mxu1 %v1808_v1 }
  0x2c   : > { %491 = vperm.xlu1 %1761, %v381_v33   ;;  %476 = vperm.xlu0 %1760, %v378_v34  }
  0x30   : > { %501 = vperm.xlu1 %1761, %v383_v37   ;;  %486 = vperm.xlu0 %1760, %v380_v38  }
  0x32   : > { %1647 = vmatmul.mubr.msk.bf16.gmra.mrb[12].mxu0 %vm652_vm2, %v1774_v35  ;;  %1655 = vmatmul.mubr.msk.bf16.gmra.mrb[12].mxu1 %vm652_vm2, %v1775_v36 }
  0x33   : > { %783 = vmatprep.mubr.bf16.mxu0 %v1808_v1  ;;  %863 = vmatprep.mubr.bf16.mxu1 %v1808_v1 }
  0x34   : > { %511 = vperm.xlu1 %1761, %v385_v39   ;;  %496 = vperm.xlu0 %1760, %v382_v40  }
  0x38   : > { %521 = vperm.xlu1 %1761, %v387_v43   ;;  %506 = vperm.xlu0 %1760, %v384_v44  }
  0x3a   : > { %1648 = vmatmul.mubr.msk.bf16.gmra.mrb[16].mxu0 %vm652_vm2, %v1776_v41  ;;  %1656 = vmatmul.mubr.msk.bf16.gmra.mrb[16].mxu1 %vm652_vm2, %v1777_v42 }
  0x3b   : > { %793 = vmatprep.mubr.bf16.mxu0 %v1808_v1  ;;  %873 = vmatprep.mubr.bf16.mxu1 %v1808_v1 }
  0x3c   : > { %531 = vperm.xlu1 %1761, %v389_v45   ;;  %516 = vperm.xlu0 %1760, %v386_v46  }
  0x40   : > { %541 = vperm.xlu1 %1761, %v391_v49   ;;  %526 = vperm.xlu0 %1760, %v388_v50  }
  0x42   : > { %1649 = vmatmul.mubr.msk.bf16.gmra.mrb[20].mxu0 %vm652_vm2, %v1778_v47  ;;  %1657 = vmatmul.mubr.msk.bf16.gmra.mrb[20].mxu1 %vm652_vm2, %v1779_v48 }
  0x43   : > { %803 = vmatprep.mubr.bf16.mxu0 %v1808_v1  ;;  %883 = vmatprep.mubr.bf16.mxu1 %v1808_v1 }
  0x44   : > { %551 = vperm.xlu1 %1761, %v393_v51   ;;  %536 = vperm.xlu0 %1760, %v390_v52  }
  0x48   : > { %546 = vperm.xlu0 %1760, %v392_v55  }
  0x4a   : > { %1650 = vmatmul.mubr.msk.bf16.gmra.mrb[24].mxu0 %vm652_vm2, %v1780_v53  ;;  %1658 = vmatmul.mubr.msk.bf16.gmra.mrb[24].mxu1 %vm652_vm2, %v1781_v54 }
  0x4b   : > { %813 = vmatprep.mubr.bf16.mxu0 %v1808_v1  ;;  %893 = vmatprep.mubr.bf16.mxu1 %v1808_v1 }
  0x52   : > { %1651 = vmatmul.mubr.msk.bf16.gmra.mrb[28].mxu0 %vm652_vm2, %v1782_v56  ;;  %1659 = vmatmul.mubr.msk.bf16.gmra.mrb[28].mxu1 %vm652_vm2, %v1783_v57 }
  0x87   : > { %v2110_v59 = vpop.permute.xlu1 %406 }
  0x89   : > { %v397_v60 = vpop.permute.xlu0 %396 }
  0x8b   : > { %v2112_v61 = vpop.permute.xlu1 %411 }
  0x8d   : > { %v402_v62 = vpop.permute.xlu0 %401 }
  0x8f   : > { %v2114_v63 = vpop.permute.xlu1 %421 }
  0x93   : > { %v2116_v0 = vpop.permute.xlu0 %416  ;;  %v2118_v1 = vpop.permute.xlu1 %431 }
  0x97   : > { %v2120_v2 = vpop.permute.xlu0 %426  ;;  %v2122_v3 = vpop.permute.xlu1 %441 }
  0x9b   : > { %v2124_v4 = vpop.permute.xlu0 %436  ;;  %v2126_v5 = vpop.permute.xlu1 %451 }
  0x9f   : > { %v2128_v6 = vpop.permute.xlu0 %446  ;;  %v2130_v7 = vpop.permute.xlu1 %461 }
  0xa3   : > { %v2132_v8 = vpop.permute.xlu0 %456  ;;  %v2134_v9 = vpop.permute.xlu1 %471 }
  0xa7   : > { %v2136_v10 = vpop.permute.xlu0 %466  ;;  %v482_v11 = vpop.permute.xlu1 %481 }
  0xab   : > { %v477_v12 = vpop.permute.xlu0 %476  ;;  %v492_v39 = vpop.permute.xlu1 %491 }
  0xaf   : > { %v487_v40 = vpop.permute.xlu0 %486 }
  0xed   : > { %v745_v13 = vpop.f32.mrb[0].mxu0  ;;  %v825_v14 = vpop.f32.mrb[0].mxu1 }
  0xee   : > { %v746_v15 = vadd.f32 %v745_v13, %v397_v60  ;;  %v826_v16 = vadd.f32 %v825_v14, %v477_v12  ;;  %v747_v17 = vpop.f32.mrb[1].mxu0  ;;  %v827_v18 = vpop.f32.mrb[1].mxu1 }
  0xef   : > { %v748_v19 = vadd.f32 %v747_v17, %v397_v60  ;;  %v828_v20 = vadd.f32 %v827_v18, %v477_v12  ;;  %v749_v21 = vpop.f32.mrb[2].mxu0  ;;  %v829_v22 = vpop.f32.mrb[2].mxu1 }
  0xf0   : > { %v904_v23 = vmax.f32 %v746_v15, 0.0  ;;  %v936_v24 = vmax.f32 %v826_v16, 0.0  ;;  %v750_v25 = vadd.f32 %v749_v21, %v402_v62  ;;  %v830_v26 = vadd.f32 %v829_v22, %v482_v11  ;;  %v751_v27 = vpop.f32.mrb[3].mxu0  ;;  %v831_v28 = vpop.f32.mrb[3].mxu1 }
  0xf1   : > { %v905_v29 = vmax.f32 %v748_v19, 0.0  ;;  %v937_v30 = vmax.f32 %v828_v20, 0.0  ;;  %v752_v31 = vadd.f32 %v751_v27, %v402_v62  ;;  %v832_v32 = vadd.f32 %v831_v28, %v482_v11  ;;  %v502_v22 = vpop.permute.xlu1 %501 }
  0xf2   : > { %v906_v33 = vmax.f32 %v750_v25, 0.0  ;;  %v938_v34 = vmax.f32 %v830_v26, 0.0 }
  0xf3   : > { %v1697_v35 = vpack.c.bf16 %v905_v29, %v904_v23  ;;  %v1713_v36 = vpack.c.bf16 %v937_v30, %v936_v24  ;;  %v907_v37 = vmax.f32 %v752_v31, 0.0  ;;  %v939_v38 = vmax.f32 %v832_v32, 0.0 }
  0xf4   : > { %v1309_v41 = vadd.f32 %v937_v30, %v936_v24  ;;  %v1261_v42 = vadd.f32 %v905_v29, %v904_v23  ;;  %v497_v23 = vpop.permute.xlu0 %496 }
  0xf5   : > { %1160 = vst [vmem:[%s2143_s11] sm:$0xff] %v1697_v35  ;;  %1176 = vst [vmem:[%s2143_s11 + $0x80] sm:$0xff] %v1713_v36  ;;  %v1698_v43 = vpack.c.bf16 %v907_v37, %v906_v33  ;;  %v1714_v44 = vpack.c.bf16 %v939_v38, %v938_v34  ;;  %v835_v45 = vpop.f32.mrb[4].mxu1  ;;  %v755_v46 = vpop.f32.mrb[4].mxu0  ;;  %v1264_v47 = vadd.f32 %v907_v37, %v906_v33 }
  0xf6   : > { %v1312_v48 = vadd.f32 %v939_v38, %v938_v34  ;;  %v836_v49 = vadd.f32 %v835_v45, %v487_v40  ;;  %1310 = vadd.xlane.f32.xlu1 %v1309_v41  ;;  %v756_v50 = vadd.f32 %v755_v46, %v2110_v59  ;;  %1262 = vadd.xlane.f32.xlu0 %v1261_v42  ;;  %v757_v51 = vpop.f32.mrb[5].mxu0  ;;  %v837_v52 = vpop.f32.mrb[5].mxu1 }
  0xf7   : > { %1161 = vst [vmem:[%s2143_s11 + $0x8] sm:$0xff] %v1698_v43  ;;  %1177 = vst [vmem:[%s2143_s11 + $0x88] sm:$0xff] %v1714_v44  ;;  %v758_v53 = vadd.f32 %v757_v51, %v2110_v59  ;;  %v838_v54 = vadd.f32 %v837_v52, %v487_v40  ;;  %v759_v55 = vpop.f32.mrb[6].mxu0  ;;  %v839_v56 = vpop.f32.mrb[6].mxu1 }
  0xf8   : > { %v940_v57 = vmax.f32 %v836_v49, 0.0  ;;  %v908_v58 = vmax.f32 %v756_v50, 0.0  ;;  %v760_v60 = vadd.f32 %v759_v55, %v2112_v61  ;;  %v840_v62 = vadd.f32 %v839_v56, %v492_v39  ;;  %v761_v11 = vpop.f32.mrb[7].mxu0  ;;  %v841_v12 = vpop.f32.mrb[7].mxu1 }
  0xf9   : > { %v909_v13 = vmax.f32 %v758_v53, 0.0  ;;  %v941_v14 = vmax.f32 %v838_v54, 0.0  ;;  %v762_v15 = vadd.f32 %v761_v11, %v2112_v61  ;;  %v842_v16 = vadd.f32 %v841_v12, %v492_v39  ;;  %v512_v54 = vpop.permute.xlu1 %511  ;;  %v507_v55 = vpop.permute.xlu0 %506 }
  0xfa   : > { %v910_v17 = vmax.f32 %v760_v60, 0.0  ;;  %v942_v18 = vmax.f32 %v840_v62, 0.0  ;;  %1265 = vadd.xlane.f32.xlu1 %v1264_v47  ;;  %1313 = vadd.xlane.f32.xlu0 %v1312_v48 }
  0xfb   : > { %v1699_v59 = vpack.c.bf16 %v909_v13, %v908_v58  ;;  %v1715_v19 = vpack.c.bf16 %v941_v14, %v940_v57  ;;  %v911_v20 = vmax.f32 %v762_v15, 0.0  ;;  %v943_v21 = vmax.f32 %v842_v16, 0.0 }
  0xfc   : > { %v1315_v24 = vadd.f32 %v941_v14, %v940_v57  ;;  %v1267_v25 = vadd.f32 %v909_v13, %v908_v58 }
  0xfd   : > { %1162 = vst [vmem:[%s2143_s11 + $0x10] sm:$0xff] %v1699_v59  ;;  %1178 = vst [vmem:[%s2143_s11 + $0x90] sm:$0xff] %v1715_v19  ;;  %v1700_v26 = vpack.c.bf16 %v911_v20, %v910_v17  ;;  %v1716_v27 = vpack.c.bf16 %v943_v21, %v942_v18  ;;  %v765_v61 = vpop.f32.mrb[8].mxu0  ;;  %v845_v28 = vpop.f32.mrb[8].mxu1  ;;  %v1270_v29 = vadd.f32 %v911_v20, %v910_v17 }
  0xfe   : > { %v1318_v30 = vadd.f32 %v943_v21, %v942_v18  ;;  %v766_v31 = vadd.f32 %v765_v61, %v2116_v0  ;;  %v846_v32 = vadd.f32 %v845_v28, %v497_v23  ;;  %1316 = vadd.xlane.f32.xlu1 %v1315_v24  ;;  %1268 = vadd.xlane.f32.xlu0 %v1267_v25  ;;  %v767_v33 = vpop.f32.mrb[9].mxu0  ;;  %v847_v34 = vpop.f32.mrb[9].mxu1 }
  0xff   : > { %1163 = vst [vmem:[%s2143_s11 + $0x18] sm:$0xff] %v1700_v26  ;;  %1179 = vst [vmem:[%s2143_s11 + $0x98] sm:$0xff] %v1716_v27  ;;  %v768_v35 = vadd.f32 %v767_v33, %v2116_v0  ;;  %v848_v36 = vadd.f32 %v847_v34, %v497_v23  ;;  %v769_v37 = vpop.f32.mrb[10].mxu0  ;;  %v849_v38 = vpop.f32.mrb[10].mxu1 }
 0x100   : > { %v912_v39 = vmax.f32 %v766_v31, 0.0  ;;  %v944_v40 = vmax.f32 %v846_v32, 0.0  ;;  %v770_v41 = vadd.f32 %v769_v37, %v2114_v63  ;;  %v850_v42 = vadd.f32 %v849_v38, %v502_v22  ;;  %v771_v43 = vpop.f32.mrb[11].mxu0  ;;  %v851_v44 = vpop.f32.mrb[11].mxu1 }
 0x101   : > { %v913_v45 = vmax.f32 %v768_v35, 0.0  ;;  %v945_v46 = vmax.f32 %v848_v36, 0.0  ;;  %v772_v47 = vadd.f32 %v771_v43, %v2114_v63  ;;  %v852_v48 = vadd.f32 %v851_v44, %v502_v22  ;;  %v522_v34 = vpop.permute.xlu1 %521  ;;  %v517_v35 = vpop.permute.xlu0 %516 }
 0x102   : > { %v914_v49 = vmax.f32 %v770_v41, 0.0  ;;  %v946_v50 = vmax.f32 %v850_v42, 0.0  ;;  %1271 = vadd.xlane.f32.xlu0 %v1270_v29 }
 0x103   : > { %v1701_v0 = vpack.c.bf16 %v913_v45, %v912_v39  ;;  %v1717_v51 = vpack.c.bf16 %v945_v46, %v944_v40  ;;  %v915_v52 = vmax.f32 %v772_v47, 0.0  ;;  %v947_v53 = vmax.f32 %v852_v48, 0.0 }
 0x104   : > { %v1273_v56 = vadd.f32 %v913_v45, %v912_v39  ;;  %v1321_v57 = vadd.f32 %v945_v46, %v944_v40 }
 0x105   : > { %1164 = vst [vmem:[%s2143_s11 + $0x20] sm:$0xff] %v1701_v0  ;;  %1180 = vst [vmem:[%s2143_s11 + $0xa0] sm:$0xff] %v1717_v51  ;;  %v1702_v58 = vpack.c.bf16 %v915_v52, %v914_v49  ;;  %v1718_v60 = vpack.c.bf16 %v947_v53, %v946_v50  ;;  %v775_v62 = vpop.f32.mrb[12].mxu0  ;;  %v855_v63 = vpop.f32.mrb[12].mxu1  ;;  %v1276_v11 = vadd.f32 %v915_v52, %v914_v49 }
 0x106   : > { %v1324_v12 = vadd.f32 %v947_v53, %v946_v50  ;;  %v776_v13 = vadd.f32 %v775_v62, %v2120_v2  ;;  %v856_v14 = vadd.f32 %v855_v63, %v507_v55  ;;  %1274 = vadd.xlane.f32.xlu1 %v1273_v56  ;;  %1319 = vadd.xlane.f32.xlu0 %v1318_v30  ;;  %v777_v15 = vpop.f32.mrb[13].mxu0  ;;  %v857_v16 = vpop.f32.mrb[13].mxu1 }
 0x107   : > { %1165 = vst [vmem:[%s2143_s11 + $0x28] sm:$0xff] %v1702_v58  ;;  %1181 = vst [vmem:[%s2143_s11 + $0xa8] sm:$0xff] %v1718_v60  ;;  %v778_v17 = vadd.f32 %v777_v15, %v2120_v2  ;;  %v858_v18 = vadd.f32 %v857_v16, %v507_v55  ;;  %v779_v59 = vpop.f32.mrb[14].mxu0  ;;  %v859_v19 = vpop.f32.mrb[14].mxu1 }
 0x108   : > { %v916_v20 = vmax.f32 %v776_v13, 0.0  ;;  %v948_v21 = vmax.f32 %v856_v14, 0.0  ;;  %v780_v22 = vadd.f32 %v779_v59, %v2118_v1  ;;  %v860_v23 = vadd.f32 %v859_v19, %v512_v54  ;;  %v781_v24 = vpop.f32.mrb[15].mxu0  ;;  %v861_v25 = vpop.f32.mrb[15].mxu1 }
 0x109   : > { %v917_v26 = vmax.f32 %v778_v17, 0.0  ;;  %v949_v27 = vmax.f32 %v858_v18, 0.0  ;;  %v782_v61 = vadd.f32 %v781_v24, %v2118_v1  ;;  %v862_v28 = vadd.f32 %v861_v25, %v512_v54  ;;  %v532_v14 = vpop.permute.xlu1 %531  ;;  %v527_v15 = vpop.permute.xlu0 %526 }
 0x10a   : > { %v918_v29 = vmax.f32 %v780_v22, 0.0  ;;  %v950_v30 = vmax.f32 %v860_v23, 0.0  ;;  %1322 = vadd.xlane.f32.xlu1 %v1321_v57  ;;  %1277 = vadd.xlane.f32.xlu0 %v1276_v11 }
 0x10b   : > { %v1703_v2 = vpack.c.bf16 %v917_v26, %v916_v20  ;;  %v1719_v31 = vpack.c.bf16 %v949_v27, %v948_v21  ;;  %v919_v32 = vmax.f32 %v782_v61, 0.0  ;;  %v951_v33 = vmax.f32 %v862_v28, 0.0 }
 0x10c   : > { %v1279_v36 = vadd.f32 %v917_v26, %v916_v20  ;;  %v1327_v37 = vadd.f32 %v949_v27, %v948_v21 }
 0x10d   : > { %1166 = vst [vmem:[%s2143_s11 + $0x30] sm:$0xff] %v1703_v2  ;;  %1182 = vst [vmem:[%s2143_s11 + $0xb0] sm:$0xff] %v1719_v31  ;;  %v1704_v38 = vpack.c.bf16 %v919_v32, %v918_v29  ;;  %v1720_v39 = vpack.c.bf16 %v951_v33, %v950_v30  ;;  %v785_v1 = vpop.f32.mrb[16].mxu0  ;;  %v865_v40 = vpop.f32.mrb[16].mxu1  ;;  %v1282_v41 = vadd.f32 %v919_v32, %v918_v29 }
 0x10e   : > { %v1330_v42 = vadd.f32 %v951_v33, %v950_v30  ;;  %v786_v43 = vadd.f32 %v785_v1, %v2124_v4  ;;  %v866_v44 = vadd.f32 %v865_v40, %v517_v35  ;;  %1280 = vadd.xlane.f32.xlu1 %v1279_v36  ;;  %1325 = vadd.xlane.f32.xlu0 %v1324_v12  ;;  %v787_v45 = vpop.f32.mrb[17].mxu0  ;;  %v867_v46 = vpop.f32.mrb[17].mxu1 }
 0x10f   : > { %1167 = vst [vmem:[%s2143_s11 + $0x38] sm:$0xff] %v1704_v38  ;;  %1183 = vst [vmem:[%s2143_s11 + $0xb8] sm:$0xff] %v1720_v39  ;;  %v788_v47 = vadd.f32 %v787_v45, %v2124_v4  ;;  %v868_v48 = vadd.f32 %v867_v46, %v517_v35  ;;  %v789_v49 = vpop.f32.mrb[18].mxu0  ;;  %v869_v50 = vpop.f32.mrb[18].mxu1 }
 0x110   : > { %v920_v0 = vmax.f32 %v786_v43, 0.0  ;;  %v952_v51 = vmax.f32 %v866_v44, 0.0  ;;  %v790_v52 = vadd.f32 %v789_v49, %v2122_v3  ;;  %v870_v53 = vadd.f32 %v869_v50, %v522_v34  ;;  %v791_v54 = vpop.f32.mrb[19].mxu0  ;;  %v871_v55 = vpop.f32.mrb[19].mxu1 }
 0x111   : > { %v921_v56 = vmax.f32 %v788_v47, 0.0  ;;  %v953_v57 = vmax.f32 %v868_v48, 0.0  ;;  %v792_v58 = vadd.f32 %v791_v54, %v2122_v3  ;;  %v872_v60 = vadd.f32 %v871_v55, %v522_v34  ;;  %v537_v43 = vpop.permute.xlu0 %536 }
 0x112   : > { %v922_v62 = vmax.f32 %v790_v52, 0.0  ;;  %v954_v63 = vmax.f32 %v870_v53, 0.0  ;;  %1328 = vadd.xlane.f32.xlu1 %v1327_v37  ;;  %1283 = vadd.xlane.f32.xlu0 %v1282_v41 }
 0x113   : > { %v1705_v4 = vpack.c.bf16 %v921_v56, %v920_v0  ;;  %v1721_v11 = vpack.c.bf16 %v953_v57, %v952_v51  ;;  %v923_v12 = vmax.f32 %v792_v58, 0.0  ;;  %v955_v13 = vmax.f32 %v872_v60, 0.0 }
 0x114   : > { %v1285_v16 = vadd.f32 %v921_v56, %v920_v0  ;;  %v1333_v17 = vadd.f32 %v953_v57, %v952_v51 }
 0x115   : > { %1168 = vst [vmem:[%s2143_s11 + $0x40] sm:$0xff] %v1705_v4  ;;  %1184 = vst [vmem:[%s2143_s11 + $0xc0] sm:$0xff] %v1721_v11  ;;  %v1706_v18 = vpack.c.bf16 %v923_v12, %v922_v62  ;;  %v1722_v59 = vpack.c.bf16 %v955_v13, %v954_v63  ;;  %v795_v3 = vpop.f32.mrb[20].mxu0  ;;  %v875_v19 = vpop.f32.mrb[20].mxu1  ;;  %v1288_v20 = vadd.f32 %v923_v12, %v922_v62 }
 0x116   : > { %v1336_v21 = vadd.f32 %v955_v13, %v954_v63  ;;  %v796_v22 = vadd.f32 %v795_v3, %v2128_v6  ;;  %v876_v23 = vadd.f32 %v875_v19, %v527_v15  ;;  %1286 = vadd.xlane.f32.xlu1 %v1285_v16  ;;  %1331 = vadd.xlane.f32.xlu0 %v1330_v42  ;;  %v797_v24 = vpop.f32.mrb[21].mxu0  ;;  %v877_v25 = vpop.f32.mrb[21].mxu1 }
 0x117   : > { %1169 = vst [vmem:[%s2143_s11 + $0x48] sm:$0xff] %v1706_v18  ;;  %1185 = vst [vmem:[%s2143_s11 + $0xc8] sm:$0xff] %v1722_v59  ;;  %v798_v26 = vadd.f32 %v797_v24, %v2128_v6  ;;  %v878_v27 = vadd.f32 %v877_v25, %v527_v15  ;;  %v799_v61 = vpop.f32.mrb[22].mxu0  ;;  %v879_v28 = vpop.f32.mrb[22].mxu1 }
 0x118   : > { %v924_v29 = vmax.f32 %v796_v22, 0.0  ;;  %v956_v30 = vmax.f32 %v876_v23, 0.0  ;;  %v800_v2 = vadd.f32 %v799_v61, %v2126_v5  ;;  %v880_v31 = vadd.f32 %v879_v28, %v532_v14  ;;  %v801_v32 = vpop.f32.mrb[23].mxu0  ;;  %v881_v33 = vpop.f32.mrb[23].mxu1 }
 0x119   : > { %v925_v34 = vmax.f32 %v798_v26, 0.0  ;;  %v957_v35 = vmax.f32 %v878_v27, 0.0  ;;  %v802_v36 = vadd.f32 %v801_v32, %v2126_v5  ;;  %v882_v37 = vadd.f32 %v881_v33, %v532_v14  ;;  %v542_v42 = vpop.permute.xlu1 %541 }
 0x11a   : > { %v926_v38 = vmax.f32 %v800_v2, 0.0  ;;  %v958_v39 = vmax.f32 %v880_v31, 0.0  ;;  %1334 = vadd.xlane.f32.xlu1 %v1333_v17  ;;  %1289 = vadd.xlane.f32.xlu0 %v1288_v20  ;;  %v547_v20 = vpop.permute.xlu0 %546 }
 0x11b   : > { %v1707_v6 = vpack.c.bf16 %v925_v34, %v924_v29  ;;  %v1723_v1 = vpack.c.bf16 %v957_v35, %v956_v30  ;;  %v927_v40 = vmax.f32 %v802_v36, 0.0  ;;  %v959_v41 = vmax.f32 %v882_v37, 0.0 }
 0x11c   : > { %v1291_v44 = vadd.f32 %v925_v34, %v924_v29  ;;  %v1339_v45 = vadd.f32 %v957_v35, %v956_v30 }
 0x11d   : > { %1170 = vst [vmem:[%s2143_s11 + $0x50] sm:$0xff] %v1707_v6  ;;  %1186 = vst [vmem:[%s2143_s11 + $0xd0] sm:$0xff] %v1723_v1  ;;  %v1708_v46 = vpack.c.bf16 %v927_v40, %v926_v38  ;;  %v1724_v47 = vpack.c.bf16 %v959_v41, %v958_v39  ;;  %v805_v5 = vpop.f32.mrb[24].mxu0  ;;  %v885_v48 = vpop.f32.mrb[24].mxu1  ;;  %v1294_v49 = vadd.f32 %v927_v40, %v926_v38 }
 0x11e   : > { %v1342_v50 = vadd.f32 %v959_v41, %v958_v39  ;;  %v806_v0 = vadd.f32 %v805_v5, %v2132_v8  ;;  %v886_v51 = vadd.f32 %v885_v48, %v537_v43  ;;  %1292 = vadd.xlane.f32.xlu1 %v1291_v44  ;;  %1337 = vadd.xlane.f32.xlu0 %v1336_v21  ;;  %v807_v52 = vpop.f32.mrb[25].mxu0  ;;  %v887_v53 = vpop.f32.mrb[25].mxu1 }
 0x11f   : > { %1171 = vst [vmem:[%s2143_s11 + $0x58] sm:$0xff] %v1708_v46  ;;  %1187 = vst [vmem:[%s2143_s11 + $0xd8] sm:$0xff] %v1724_v47  ;;  %v808_v54 = vadd.f32 %v807_v52, %v2132_v8  ;;  %v888_v55 = vadd.f32 %v887_v53, %v537_v43  ;;  %v809_v56 = vpop.f32.mrb[26].mxu0  ;;  %v889_v57 = vpop.f32.mrb[26].mxu1 }
 0x120   : > { %v928_v58 = vmax.f32 %v806_v0, 0.0  ;;  %v960_v60 = vmax.f32 %v886_v51, 0.0  ;;  %v810_v62 = vadd.f32 %v809_v56, %v2130_v7  ;;  %v890_v63 = vadd.f32 %v889_v57, %v542_v42  ;;  %v811_v4 = vpop.f32.mrb[27].mxu0  ;;  %v891_v11 = vpop.f32.mrb[27].mxu1  ;;  %v1245_v0 = vld [vmem:[%s2044_s8 + $0x80] sm:$0xff]  ;;  %v1230_v56 = vld [vmem:[%s2044_s8 + $0x8] sm:$0xff] }
 0x121   : > { %v929_v12 = vmax.f32 %v808_v54, 0.0  ;;  %v961_v13 = vmax.f32 %v888_v55, 0.0  ;;  %v812_v14 = vadd.f32 %v811_v4, %v2130_v7  ;;  %v892_v15 = vadd.f32 %v891_v11, %v542_v42  ;;  %v552_v19 = vpop.permute.xlu1 %551  ;;  %v1229_v51 = vld [vmem:[%s2044_s8] sm:$0xff]  ;;  %v1246_v57 = vld [vmem:[%s2044_s8 + $0x88] sm:$0xff]  ;;  %v1247_v4 = vld [vmem:[%s2044_s8 + $0x90] sm:$0xff] }
 0x122   : > { %v930_v16 = vmax.f32 %v810_v62, 0.0  ;;  %v962_v17 = vmax.f32 %v890_v63, 0.0  ;;  %1340 = vadd.xlane.f32.xlu1 %v1339_v45  ;;  %1295 = vadd.xlane.f32.xlu0 %v1294_v49  ;;  %v1231_v11 = vld [vmem:[%s2044_s8 + $0x10] sm:$0xff] }
 0x123   : > { %v1709_v8 = vpack.c.bf16 %v929_v12, %v928_v58  ;;  %v1725_v18 = vpack.c.bf16 %v961_v13, %v960_v60  ;;  %v931_v59 = vmax.f32 %v812_v14, 0.0  ;;  %v963_v3 = vmax.f32 %v892_v15, 0.0 }
 0x124   : > { %v1297_v21 = vadd.f32 %v929_v12, %v928_v58  ;;  %v1345_v22 = vadd.f32 %v961_v13, %v960_v60 }
 0x125   : > { %1172 = vst [vmem:[%s2143_s11 + $0x60] sm:$0xff] %v1709_v8  ;;  %1188 = vst [vmem:[%s2143_s11 + $0xe0] sm:$0xff] %v1725_v18  ;;  %v1710_v23 = vpack.c.bf16 %v931_v59, %v930_v16  ;;  %v1726_v24 = vpack.c.bf16 %v963_v3, %v962_v17  ;;  %v815_v7 = vpop.f32.mrb[28].mxu0  ;;  %v895_v25 = vpop.f32.mrb[28].mxu1  ;;  %v1300_v26 = vadd.f32 %v931_v59, %v930_v16  ;;  %v1232_v16 = vld [vmem:[%s2044_s8 + $0x18] sm:$0xff]  ;;  %v1233_v18 = vld [vmem:[%s2044_s8 + $0x20] sm:$0xff] }
 0x126   : > { %v1348_v27 = vadd.f32 %v963_v3, %v962_v17  ;;  %v816_v61 = vadd.f32 %v815_v7, %v2136_v10  ;;  %v896_v28 = vadd.f32 %v895_v25, %v547_v20  ;;  %1298 = vadd.xlane.f32.xlu1 %v1297_v21  ;;  %1343 = vadd.xlane.f32.xlu0 %v1342_v50  ;;  %v817_v29 = vpop.f32.mrb[29].mxu0  ;;  %v897_v30 = vpop.f32.mrb[29].mxu1  ;;  %v1248_v59 = vld [vmem:[%s2044_s8 + $0x98] sm:$0xff] }
 0x127   : > { %1173 = vst [vmem:[%s2143_s11 + $0x68] sm:$0xff] %v1710_v23  ;;  %1189 = vst [vmem:[%s2143_s11 + $0xe8] sm:$0xff] %v1726_v24  ;;  %v818_v2 = vadd.f32 %v817_v29, %v2136_v10  ;;  %v898_v31 = vadd.f32 %v897_v30, %v547_v20  ;;  %v819_v32 = vpop.f32.mrb[30].mxu0  ;;  %v899_v33 = vpop.f32.mrb[30].mxu1  ;;  %v1234_v23 = vld [vmem:[%s2044_s8 + $0x28] sm:$0xff] }
 0x128   : > { %v932_v34 = vmax.f32 %v816_v61, 0.0  ;;  %v964_v35 = vmax.f32 %v896_v28, 0.0  ;;  %v820_v36 = vadd.f32 %v819_v32, %v2134_v9  ;;  %v900_v37 = vadd.f32 %v899_v33, %v552_v19  ;;  %v821_v38 = vpop.f32.mrb[31].mxu0  ;;  %v901_v39 = vpop.f32.mrb[31].mxu1  ;;  %v1250_v61 = vld [vmem:[%s2044_s8 + $0xa8] sm:$0xff]  ;;  %v1236_v32 = vld [vmem:[%s2044_s8 + $0x38] sm:$0xff] }
 0x129   : > { %v933_v6 = vmax.f32 %v818_v2, 0.0  ;;  %v965_v1 = vmax.f32 %v898_v31, 0.0  ;;  %v822_v40 = vadd.f32 %v821_v38, %v2134_v9  ;;  %v902_v41 = vadd.f32 %v901_v39, %v552_v19  ;;  %v1251_v31 = vld [vmem:[%s2044_s8 + $0xb0] sm:$0xff]  ;;  %v1252_v38 = vld [vmem:[%s2044_s8 + $0xb8] sm:$0xff] }
 0x12a   : > { %v934_v42 = vmax.f32 %v820_v36, 0.0  ;;  %v966_v43 = vmax.f32 %v900_v37, 0.0  ;;  %1346 = vadd.xlane.f32.xlu1 %v1345_v22  ;;  %1301 = vadd.xlane.f32.xlu0 %v1300_v26  ;;  %v1249_v22 = vld [vmem:[%s2044_s8 + $0xa0] sm:$0xff] }
 0x12b   : > { %v1711_v10 = vpack.c.bf16 %v933_v6, %v932_v34  ;;  %v1727_v44 = vpack.c.bf16 %v965_v1, %v964_v35  ;;  %v935_v45 = vmax.f32 %v822_v40, 0.0  ;;  %v967_v46 = vmax.f32 %v902_v41, 0.0  ;;  %v1237_v37 = vld [vmem:[%s2044_s8 + $0x40] sm:$0xff] }
 0x12c   : > { %v1303_v47 = vadd.f32 %v933_v6, %v932_v34  ;;  %v1351_v5 = vadd.f32 %v965_v1, %v964_v35  ;;  %v1253_v41 = vld [vmem:[%s2044_s8 + $0xc0] sm:$0xff] }
 0x12d   : > { %1174 = vst [vmem:[%s2143_s11 + $0x70] sm:$0xff] %v1711_v10  ;;  %1190 = vst [vmem:[%s2143_s11 + $0xf0] sm:$0xff] %v1727_v44  ;;  %v1712_v48 = vpack.c.bf16 %v935_v45, %v934_v42  ;;  %v1728_v49 = vpack.c.bf16 %v967_v46, %v966_v43  ;;  %v1306_v9 = vadd.f32 %v935_v45, %v934_v42  ;;  %v1238_v42 = vld [vmem:[%s2044_s8 + $0x48] sm:$0xff] }
 0x12e   : > { %v1354_v50 = vadd.f32 %v967_v46, %v966_v43  ;;  %1304 = vadd.xlane.f32.xlu1 %v1303_v47  ;;  %1349 = vadd.xlane.f32.xlu0 %v1348_v27  ;;  %v1235_v27 = vld [vmem:[%s2044_s8 + $0x30] sm:$0xff]  ;;  %v1254_v47 = vld [vmem:[%s2044_s8 + $0xc8] sm:$0xff] }
 0x12f   : > { %1175 = vst [vmem:[%s2143_s11 + $0x78] sm:$0xff] %v1712_v48  ;;  %1191 = vst [vmem:[%s2143_s11 + $0xf8] sm:$0xff] %v1728_v49  ;;  %v1239_v46 = vld [vmem:[%s2044_s8 + $0x50] sm:$0xff] }
 0x132   : > { %1352 = vadd.xlane.f32.xlu1 %v1351_v5  ;;  %1307 = vadd.xlane.f32.xlu0 %v1306_v9 }
 0x136   : > { %1355 = vadd.xlane.f32.xlu0 %v1354_v50  ;;  %v1255_v50 = vld [vmem:[%s2044_s8 + $0xd0] sm:$0xff] }
 0x183   : > { %v1311_v52 = vpop.xlane.xlu1 %1310  ;;  %v1263_v53 = vpop.xlane.xlu0 %1262 }
 0x184   : > { %v1373_v54 = vadd.f32 %v1311_v52, %v1245_v0  ;;  %v1357_v55 = vadd.f32 %v1263_v53, %v1229_v51  ;;  %v1240_v0 = vld [vmem:[%s2044_s8 + $0x58] sm:$0xff] }
 0x186   : > { %1406 = vst.msk [vmem:[%s2044_s8 + $0x80] sm:$0xff] %vm1196_vm3, %v1373_v54  ;;  %1390 = vst.msk [vmem:[%s2044_s8] sm:$0xff] %vm1196_vm3, %v1357_v55  ;;  %v1241_v55 = vld [vmem:[%s2044_s8 + $0x60] sm:$0xff] }
 0x187   : > { %v1266_v58 = vpop.xlane.xlu1 %1265  ;;  %v1314_v60 = vpop.xlane.xlu0 %1313 }
 0x188   : > { %v1358_v62 = vadd.f32 %v1266_v58, %v1230_v56  ;;  %v1374_v63 = vadd.f32 %v1314_v60, %v1246_v57  ;;  %v1256_v56 = vld [vmem:[%s2044_s8 + $0xd8] sm:$0xff] }
 0x18a   : > { %1391 = vst.msk [vmem:[%s2044_s8 + $0x8] sm:$0xff] %vm1196_vm3, %v1358_v62  ;;  %1407 = vst.msk [vmem:[%s2044_s8 + $0x88] sm:$0xff] %vm1196_vm3, %v1374_v63  ;;  %v1257_v63 = vld [vmem:[%s2044_s8 + $0xe0] sm:$0xff] }
 0x18b   : > { %v1317_v12 = vpop.xlane.xlu1 %1316  ;;  %v1269_v13 = vpop.xlane.xlu0 %1268 }
 0x18c   : > { %v1375_v14 = vadd.f32 %v1317_v12, %v1247_v4  ;;  %v1359_v15 = vadd.f32 %v1269_v13, %v1231_v11  ;;  %v1242_v4 = vld [vmem:[%s2044_s8 + $0x68] sm:$0xff] }
 0x18e   : > { %1408 = vst.msk [vmem:[%s2044_s8 + $0x90] sm:$0xff] %vm1196_vm3, %v1375_v14  ;;  %1392 = vst.msk [vmem:[%s2044_s8 + $0x10] sm:$0xff] %vm1196_vm3, %v1359_v15  ;;  %v1243_v15 = vld [vmem:[%s2044_s8 + $0x70] sm:$0xff] }
 0x18f   : > { %v1272_v17 = vpop.xlane.xlu0 %1271 }
 0x190   : > { %v1360_v8 = vadd.f32 %v1272_v17, %v1232_v16  ;;  %v1258_v16 = vld [vmem:[%s2044_s8 + $0xe8] sm:$0xff] }
 0x192   : > { %1393 = vst.msk [vmem:[%s2044_s8 + $0x18] sm:$0xff] %vm1196_vm3, %v1360_v8 }
 0x193   : > { %v1275_v3 = vpop.xlane.xlu1 %1274  ;;  %v1320_v19 = vpop.xlane.xlu0 %1319 }
 0x194   : > { %v1361_v20 = vadd.f32 %v1275_v3, %v1233_v18  ;;  %v1376_v21 = vadd.f32 %v1320_v19, %v1248_v59  ;;  %v1259_v3 = vld [vmem:[%s2044_s8 + $0xf0] sm:$0xff]  ;;  %v1244_v19 = vld [vmem:[%s2044_s8 + $0x78] sm:$0xff] }
 0x196   : > { %1394 = vst.msk [vmem:[%s2044_s8 + $0x20] sm:$0xff] %vm1196_vm3, %v1361_v20  ;;  %1409 = vst.msk [vmem:[%s2044_s8 + $0x98] sm:$0xff] %vm1196_vm3, %v1376_v21 }
 0x197   : > { %v1323_v24 = vpop.xlane.xlu1 %1322  ;;  %v1278_v7 = vpop.xlane.xlu0 %1277 }
 0x198   : > { %v1377_v25 = vadd.f32 %v1323_v24, %v1249_v22  ;;  %v1362_v26 = vadd.f32 %v1278_v7, %v1234_v23  ;;  %v1260_v24 = vld [vmem:[%s2044_s8 + $0xf8] sm:$0xff] }
 0x19a   : > { %1410 = vst.msk [vmem:[%s2044_s8 + $0xa0] sm:$0xff] %vm1196_vm3, %v1377_v25  ;;  %1395 = vst.msk [vmem:[%s2044_s8 + $0x28] sm:$0xff] %vm1196_vm3, %v1362_v26 }
 0x19b   : > { %v1281_v28 = vpop.xlane.xlu1 %1280  ;;  %v1326_v29 = vpop.xlane.xlu0 %1325 }
 0x19c   : > { %v1363_v30 = vadd.f32 %v1281_v28, %v1235_v27  ;;  %v1378_v2 = vadd.f32 %v1326_v29, %v1250_v61 }
 0x19e   : > { %1396 = vst.msk [vmem:[%s2044_s8 + $0x30] sm:$0xff] %vm1196_vm3, %v1363_v30  ;;  %1411 = vst.msk [vmem:[%s2044_s8 + $0xa8] sm:$0xff] %vm1196_vm3, %v1378_v2 }
 0x19f   : > { %v1329_v33 = vpop.xlane.xlu1 %1328  ;;  %v1284_v34 = vpop.xlane.xlu0 %1283 }
 0x1a0   : > { %v1379_v35 = vadd.f32 %v1329_v33, %v1251_v31  ;;  %v1364_v36 = vadd.f32 %v1284_v34, %v1236_v32 }
 0x1a2   : > { %1412 = vst.msk [vmem:[%s2044_s8 + $0xb0] sm:$0xff] %vm1196_vm3, %v1379_v35  ;;  %1397 = vst.msk [vmem:[%s2044_s8 + $0x38] sm:$0xff] %vm1196_vm3, %v1364_v36 }
 0x1a3   : > { %v1287_v39 = vpop.xlane.xlu1 %1286  ;;  %v1332_v6 = vpop.xlane.xlu0 %1331 }
 0x1a4   : > { %v1365_v1 = vadd.f32 %v1287_v39, %v1237_v37  ;;  %v1380_v40 = vadd.f32 %v1332_v6, %v1252_v38 }
 0x1a6   : > { %1398 = vst.msk [vmem:[%s2044_s8 + $0x40] sm:$0xff] %vm1196_vm3, %v1365_v1  ;;  %1413 = vst.msk [vmem:[%s2044_s8 + $0xb8] sm:$0xff] %vm1196_vm3, %v1380_v40 }
 0x1a7   : > { %v1335_v43 = vpop.xlane.xlu1 %1334  ;;  %v1290_v10 = vpop.xlane.xlu0 %1289 }
 0x1a8   : > { %v1381_v44 = vadd.f32 %v1335_v43, %v1253_v41  ;;  %v1366_v45 = vadd.f32 %v1290_v10, %v1238_v42 }
 0x1aa   : > { %1414 = vst.msk [vmem:[%s2044_s8 + $0xc0] sm:$0xff] %vm1196_vm3, %v1381_v44  ;;  %1399 = vst.msk [vmem:[%s2044_s8 + $0x48] sm:$0xff] %vm1196_vm3, %v1366_v45 }
 0x1ab   : > { %v1293_v5 = vpop.xlane.xlu1 %1292  ;;  %v1338_v48 = vpop.xlane.xlu0 %1337 }
 0x1ac   : > { %v1367_v49 = vadd.f32 %v1293_v5, %v1239_v46  ;;  %v1382_v9 = vadd.f32 %v1338_v48, %v1254_v47 }
 0x1ae   : > { %1400 = vst.msk [vmem:[%s2044_s8 + $0x50] sm:$0xff] %vm1196_vm3, %v1367_v49  ;;  %1415 = vst.msk [vmem:[%s2044_s8 + $0xc8] sm:$0xff] %vm1196_vm3, %v1382_v9 }
 0x1af   : > { %v1341_v51 = vpop.xlane.xlu1 %1340  ;;  %v1296_v52 = vpop.xlane.xlu0 %1295 }
 0x1b0   : > { %v1383_v53 = vadd.f32 %v1341_v51, %v1255_v50  ;;  %v1368_v54 = vadd.f32 %v1296_v52, %v1240_v0 }
 0x1b2   : > { %1416 = vst.msk [vmem:[%s2044_s8 + $0xd0] sm:$0xff] %vm1196_vm3, %v1383_v53  ;;  %1401 = vst.msk [vmem:[%s2044_s8 + $0x58] sm:$0xff] %vm1196_vm3, %v1368_v54 }
 0x1b3   : > { %v1299_v57 = vpop.xlane.xlu1 %1298  ;;  %v1344_v58 = vpop.xlane.xlu0 %1343 }
 0x1b4   : > { %v1369_v60 = vadd.f32 %v1299_v57, %v1241_v55  ;;  %v1384_v62 = vadd.f32 %v1344_v58, %v1256_v56 }
 0x1b6   : > { %1402 = vst.msk [vmem:[%s2044_s8 + $0x60] sm:$0xff] %vm1196_vm3, %v1369_v60  ;;  %1417 = vst.msk [vmem:[%s2044_s8 + $0xd8] sm:$0xff] %vm1196_vm3, %v1384_v62 }
 0x1b7   : > { %v1347_v11 = vpop.xlane.xlu1 %1346  ;;  %v1302_v12 = vpop.xlane.xlu0 %1301 }
 0x1b8   : > { %v1385_v13 = vadd.f32 %v1347_v11, %v1257_v63  ;;  %v1370_v14 = vadd.f32 %v1302_v12, %v1242_v4 }
 0x1ba   : > { %1418 = vst.msk [vmem:[%s2044_s8 + $0xe0] sm:$0xff] %vm1196_vm3, %v1385_v13  ;;  %1403 = vst.msk [vmem:[%s2044_s8 + $0x68] sm:$0xff] %vm1196_vm3, %v1370_v14 }
 0x1bb   : > { %v1305_v17 = vpop.xlane.xlu1 %1304  ;;  %v1350_v8 = vpop.xlane.xlu0 %1349 }
 0x1bc   : > { %v1371_v18 = vadd.f32 %v1305_v17, %v1243_v15  ;;  %v1386_v59 = vadd.f32 %v1350_v8, %v1258_v16 }
 0x1be   : > { %1404 = vst.msk [vmem:[%s2044_s8 + $0x70] sm:$0xff] %vm1196_vm3, %v1371_v18  ;;  %1419 = vst.msk [vmem:[%s2044_s8 + $0xe8] sm:$0xff] %vm1196_vm3, %v1386_v59 }
 0x1bf   : > { %v1353_v20 = vpop.xlane.xlu1 %1352  ;;  %v1308_v21 = vpop.xlane.xlu0 %1307 }
 0x1c0   : > { %v1387_v22 = vadd.f32 %v1353_v20, %v1259_v3  ;;  %v1372_v23 = vadd.f32 %v1308_v21, %v1244_v19 }
 0x1c2   : > { %1420 = vst.msk [vmem:[%s2044_s8 + $0xf0] sm:$0xff] %vm1196_vm3, %v1387_v22  ;;  %1405 = vst.msk [vmem:[%s2044_s8 + $0x78] sm:$0xff] %vm1196_vm3, %v1372_v23 }
 0x1c3   : > { %v1356_v7 = vpop.xlane.xlu0 %1355 }
 0x1c4   : > { %v1388_v25 = vadd.f32 %v1356_v7, %v1260_v24 }
 0x1c6   : > { %1421 = vst.msk [vmem:[%s2044_s8 + $0xf8] sm:$0xff] %vm1196_vm3, %v1388_v25 }
 0x1c7 PF: > { %s15_s17 = sadd.s32 1, %s1806_s17   ;;  %s2315_s15 = smov %s1802_s16 }
 0x1c8   : > { %p12_p5 = scmp.ge.s32.totalorder %s15_s17, 4   ;;  %s2316_s16 = smov %s2318_s18 }
 0x1ca   :  { %14 = sbr.rel (!%p12_p5) target bundleno = 2 (0x2), region = 84 }

</bundles_post_ra>
